<compile_context>
chip_gen: v7x
topology: tpu7x:2x2x1
jax: 0.10.0
libtpu: 0.0.40
codegen_flags: <defaults>
</compile_context>

<pallas_src>
import functools

import jax
import jax.numpy as jnp
from jax.experimental import pallas as pl
from jax.experimental.pallas import tpu as pltpu


def _round_up(v, m):
    return ((v + m - 1) // m) * m


def _pick_images_per_block(n, max_bn=8):
    """Largest divisor of n that still leaves >= 2 grid steps (both v7x TCs busy)."""
    best = 1
    for d in range(1, min(max_bn, max(n // 2, 1)) + 1):
        if n % d == 0:
            best = d
    return best


def conv_stats_kernel(x_ref, w_ref, mask_ref, y_ref, csum_ref, csq_ref, *, kh, kw, wp):
    """Pass 1: per-tap matmul-accumulated conv (lane-dense (Cout, out_w)) + masked channel
    sum / sum-of-squares reduced on the MXU.  No scratch, no patch matrix."""
    out_w = y_ref.shape[-1]
    y = jnp.zeros(y_ref.shape, jnp.float32)
    for i in range(kh):
        for j in range(kw):
            off = i * wp + j                     # static lane shift of the flat pixel axis
            y = y + jnp.dot(w_ref[i * kw + j],   # (Cout, Cin), sublane/lane aligned
                            x_ref[:, off:off + out_w],
                            preferred_element_type=jnp.float32)
    y_ref[...] = y
    # {0,1} mask column keeps wrap-around / padding pixels out of the BatchNorm stats;
    # matmul reduction keeps the cross-lane sums off the (loaded) XLU.
    csum_ref[...] = jnp.dot(y, mask_ref[...], preferred_element_type=jnp.float32)
    csq_ref[...] = jnp.dot(y * y, mask_ref[...], preferred_element_type=jnp.float32)


def bn_lrelu_kernel(y_ref, scale_ref, shift_ref, out_ref, *, slope):
    """Pass 2: purely elementwise folded BatchNorm + LeakyReLU on the stored conv result."""
    z = y_ref[...] * scale_ref[...] + shift_ref[...]
    out_ref[...] = jnp.where(z > 0, z, slope * z).astype(out_ref.dtype)


@functools.partial(jax.jit, static_argnames=("stride", "padding", "eps", "slope"))
def conv_block(x, weight, gamma, beta, *, stride, padding, eps=1e-5, slope=0.1):
    """Forward pass of ConvBlock.  x: NCHW float32, weight: (Cout, Cin, KH, KW)."""
    n, cin, h, w = x.shape
    cout, cin_w, kh, kw = weight.shape
    assert cin_w == cin
    assert stride == 1, "Pallas fast path implemented for stride == 1"

    hp, wp = h + 2 * padding, w + 2 * padding
    oh, ow = hp - kh + 1, wp - kw + 1
    m_valid = n * oh * ow                        # number of real conv outputs per channel

    bn = _pick_images_per_block(n)               # images per grid step
    nb = n // bn                                 # grid size
    l_img = _round_up(hp * wp, 128)              # per-image flat slab width (lane-dense)
    max_off = (kh - 1) * wp + (kw - 1)           # largest in-kernel tap shift
    out_w = bn * l_img                           # lane width of each conv output block
    slack = _round_up(max_off, 128)              # tail zeros so every tap slice is in-bounds
    block_l = out_w + slack                      # input block width

    # NCHW -> spatially padded -> flat per-image slabs of width l_img, images of a block
    # concatenated on the lane axis, zero tail slack appended.  This flat (nb, Cin, block_l)
    # array is the ONLY activation layout in HBM.
    xp = jnp.pad(x, ((0, 0), (0, 0), (padding, padding), (padding, padding)))
    x_row = xp.reshape(n, cin, hp * wp)
    if bn == 1:
        x_flat = jnp.pad(x_row, ((0, 0), (0, 0), (0, block_l - hp * wp)))
    else:
        x_img = jnp.pad(x_row, ((0, 0), (0, 0), (0, l_img - hp * wp)))
        x_flat = jnp.pad(
            x_img.reshape(nb, bn, cin, l_img).transpose(0, 2, 1, 3).reshape(nb, cin, out_w),
            ((0, 0), (0, 0), (0, slack)))

    # Weights as (KH*KW, Cout, Cin): each tap's (Cout, Cin) slab loads at sublane/lane 0.
    k_taps = kh * kw
    w3 = weight.transpose(2, 3, 0, 1).reshape(k_taps, cout, cin).astype(jnp.float32)

    # Validity mask over the block's lane axis (wrap columns, per-image tail padding).
    q = jnp.arange(out_w, dtype=jnp.int32)
    p = q % l_img
    valid = (p < oh * wp) & ((p % wp) < ow)
    mask_col = valid.astype(jnp.float32).reshape(out_w, 1)

    grid = (nb,)
    x_spec = pl.BlockSpec((None, cin, block_l), lambda b: (b, 0, 0))
    w_spec = pl.BlockSpec((k_taps, cout, cin), lambda b: (0, 0, 0))
    y_spec = pl.BlockSpec((None, cout, out_w), lambda b: (b, 0, 0))
    stat_spec = pl.BlockSpec((None, cout, 1), lambda b: (b, 0, 0))
    vec_spec = pl.BlockSpec((cout, 1), lambda b: (0, 0))
    cparams = pltpu.CompilerParams(dimension_semantics=("parallel",),
                                   vmem_limit_bytes=32 * 1024 * 1024)

    x_bytes = nb * cin * block_l * 4
    w_bytes = k_taps * cout * cin * 4
    y_bytes = nb * cout * out_w * 4
    conv_flops = 2 * nb * cout * cin * k_taps * out_w + 4 * nb * cout * out_w

    # ---- pass 1: conv (stored once, lane-dense) + per-block channel sum / sum-of-squares ----
    y_ext, csum, csq = pl.pallas_call(
        functools.partial(conv_stats_kernel, kh=kh, kw=kw, wp=wp),
        out_shape=(jax.ShapeDtypeStruct((nb, cout, out_w), jnp.float32),
                   jax.ShapeDtypeStruct((nb, cout, 1), jnp.float32),
                   jax.ShapeDtypeStruct((nb, cout, 1), jnp.float32)),
        grid_spec=pltpu.PrefetchScalarGridSpec(
            num_scalar_prefetch=0, grid=grid,
            in_specs=[x_spec, w_spec, pl.BlockSpec((out_w, 1), lambda b: (0, 0))],
            out_specs=[y_spec, stat_spec, stat_spec]),
        compiler_params=cparams,
        cost_estimate=pl.CostEstimate(
            flops=conv_flops, transcendentals=0,
            bytes_accessed=x_bytes + w_bytes + out_w * 4 + y_bytes + 2 * nb * cout * 4),
    )(x_flat, w3, mask_col)

    # Fold training-mode BatchNorm (biased batch variance) into per-channel scale/shift.
    # Note: one-pass E[y^2] - mean^2 is fine at these magnitudes (f32 accumulation).
    mean = jnp.sum(csum, axis=0) / m_valid                  # (Cout, 1)
    var = jnp.sum(csq, axis=0) / m_valid - mean * mean      # (Cout, 1)
    scale = gamma.reshape(cout, 1) * jax.lax.rsqrt(var + eps)
    shift = beta.reshape(cout, 1) - mean * scale

    # ---- pass 2: elementwise folded BN + LeakyReLU (no dot, no scratch, single write) ----
    out_ext = pl.pallas_call(
        functools.partial(bn_lrelu_kernel, slope=slope),
        out_shape=jax.ShapeDtypeStruct((nb, cout, out_w), x.dtype),
        grid_spec=pltpu.PrefetchScalarGridSpec(
            num_scalar_prefetch=0, grid=grid,
            in_specs=[y_spec, vec_spec, vec_spec],
            out_specs=pl.BlockSpec((None, cout, out_w), lambda b: (b, 0, 0))),
        compiler_params=cparams,
        cost_estimate=pl.CostEstimate(
            flops=4 * nb * cout * out_w, transcendentals=0,
            bytes_accessed=2 * y_bytes + 2 * cout * 4),
    )(y_ext, scale, shift)

    # (nb, Cout, bn*l_img) -> per-image (N, Cout, l_img) -> drop wrap/padding columns -> NCHW.
    if bn == 1:
        per_img = out_ext
    else:
        per_img = (out_ext.reshape(nb, cout, bn, l_img)
                   .transpose(0, 2, 1, 3).reshape(n, cout, l_img))
    out = per_img[:, :, :oh * wp].reshape(n, cout, oh, wp)[:, :, :, :ow]
    return out


def _reference(x, weight, gamma, beta, *, stride, padding, eps=1e-5, slope=0.1):
    """Pure-JAX reference with identical semantics (NCHW, train-mode BatchNorm)."""
    y = jax.lax.conv_general_dilated(
        x, weight, (stride, stride), [(padding, padding)] * 2,
        dimension_numbers=("NCHW", "OIHW", "NCHW"))
    mean = y.mean(axis=(0, 2, 3), keepdims=True)
    var = y.var(axis=(0, 2, 3), keepdims=True)   # biased, as BN uses for normalization
    z = (y - mean) / jnp.sqrt(var + eps)
    z = z * gamma.reshape(1, -1, 1, 1) + beta.reshape(1, -1, 1, 1)
    return jnp.where(z > 0, z, slope * z)


if __name__ == "__main__":
    # ConvBlock(in_channels=4, out_channels=8, kernel_size=3, stride=1, padding=1)
    N, Cin, H, W = 2, 4, 16, 16
    Cout, KH, KW = 8, 3, 3
    stride, padding = 1, 1

    key = jax.random.PRNGKey(0)
    kx, kw_, kg, kb = jax.random.split(key, 4)
    x = jax.random.normal(kx, (N, Cin, H, W), dtype=jnp.float32)
    weight = jax.random.normal(kw_, (Cout, Cin, KH, KW), dtype=jnp.float32) * 0.1
    gamma = 1.0 + 0.1 * jax.random.normal(kg, (Cout,), dtype=jnp.float32)
    beta = 0.1 * jax.random.normal(kb, (Cout,), dtype=jnp.float32)

    out = jax.block_until_ready(
        conv_block(x, weight, gamma, beta, stride=stride, padding=padding))
    ref = _reference(x, weight, gamma, beta, stride=stride, padding=padding)
    assert out.shape == (N, Cout, H, W)
    err = float(jnp.abs(out - ref).max())
    assert jnp.allclose(out, ref, rtol=2e-3, atol=2e-3), err

    # Also exercise the multi-image-per-grid-step (lane-concatenated) path: N=4 -> bn=2.
    x4 = jax.random.normal(jax.random.PRNGKey(1), (4, Cin, H, W), dtype=jnp.float32)
    out4 = jax.block_until_ready(
        conv_block(x4, weight, gamma, beta, stride=stride, padding=padding))
    ref4 = _reference(x4, weight, gamma, beta, stride=stride, padding=padding)
    err4 = float(jnp.abs(out4 - ref4).max())
    assert jnp.allclose(out4, ref4, rtol=2e-3, atol=2e-3), err4

    print("KERNEL_OK")
</pallas_src>

<mosaic_0001>
module attributes {stable_mosaic.version = 11 : i64} {
  func.func @conv_stats_kernel(%arg0: i32, %arg1: memref<1x4x512xf32, #tpu.memory_space<vmem>>, %arg2: memref<9x8x4xf32, #tpu.memory_space<vmem>>, %arg3: memref<384x1xf32, #tpu.memory_space<vmem>>, %arg4: memref<1x8x384xf32, #tpu.memory_space<vmem>>, %arg5: memref<1x8x1xf32, #tpu.memory_space<vmem>>, %arg6: memref<1x8x1xf32, #tpu.memory_space<vmem>>) attributes {dimension_semantics = [#tpu.dimension_semantics<parallel>], iteration_bounds = array<i64: 2>, scalar_prefetch = 0 : i64, scratch_operands = 0 : i64, tpu.core_type = #tpu.core_type<tc>, window_params = [{transform_indices = @transform_0, window_bounds = array<i64: 1, 4, 512>}, {pipeline_mode = #tpu.pipeline_mode<synchronous>, transform_indices = @transform_1, window_bounds = array<i64: 9, 8, 4>}, {pipeline_mode = #tpu.pipeline_mode<synchronous>, transform_indices = @transform_2, window_bounds = array<i64: 384, 1>}, {transform_indices = @transform_3, window_bounds = array<i64: 1, 8, 384>}, {transform_indices = @transform_4, window_bounds = array<i64: 1, 8, 1>}, {transform_indices = @transform_5, window_bounds = array<i64: 1, 8, 1>}]} {
    %cst = arith.constant 0.000000e+00 : f32
    %0 = vector.broadcast %cst : f32 to vector<8x384xf32>
    %c0 = arith.constant 0 : index
    %c0_0 = arith.constant 0 : index
    %c0_1 = arith.constant 0 : index
    %1 = vector.load %arg2[%c0, %c0_0, %c0_1] : memref<9x8x4xf32, #tpu.memory_space<vmem>>, vector<1x8x4xf32>
    %2 = vector.shape_cast %1 : vector<1x8x4xf32> to vector<8x4xf32>
    %c0_2 = arith.constant 0 : index
    %c0_3 = arith.constant 0 : index
    %c0_4 = arith.constant 0 : index
    %3 = vector.load %arg1[%c0_2, %c0_3, %c0_4] : memref<1x4x512xf32, #tpu.memory_space<vmem>>, vector<1x4x384xf32>
    %4 = vector.shape_cast %3 : vector<1x4x384xf32> to vector<4x384xf32>
    %cst_5 = arith.constant dense<0.000000e+00> : vector<8x384xf32>
    %5 = tpu.matmul %2, %4, %cst_5 {dimension_numbers = #tpu.dot_dimension_numbers<[1], [0], [0], [1], [0, 0, 1, 1], [], []>} : vector<8x4xf32>, vector<4x384xf32>, vector<8x384xf32> -> vector<8x384xf32>
    %6 = arith.addf %0, %5 : vector<8x384xf32>
    %c1 = arith.constant 1 : index
    %c0_6 = arith.constant 0 : index
    %c0_7 = arith.constant 0 : index
    %7 = vector.load %arg2[%c1, %c0_6, %c0_7] : memref<9x8x4xf32, #tpu.memory_space<vmem>>, vector<1x8x4xf32>
    %8 = vector.shape_cast %7 : vector<1x8x4xf32> to vector<8x4xf32>
    %c0_8 = arith.constant 0 : index
    %c0_9 = arith.constant 0 : index
    %c1_10 = arith.constant 1 : index
    %9 = vector.load %arg1[%c0_8, %c0_9, %c1_10] : memref<1x4x512xf32, #tpu.memory_space<vmem>>, vector<1x4x384xf32>
    %10 = vector.shape_cast %9 : vector<1x4x384xf32> to vector<4x384xf32>
    %cst_11 = arith.constant dense<0.000000e+00> : vector<8x384xf32>
    %11 = tpu.matmul %8, %10, %cst_11 {dimension_numbers = #tpu.dot_dimension_numbers<[1], [0], [0], [1], [0, 0, 1, 1], [], []>} : vector<8x4xf32>, vector<4x384xf32>, vector<8x384xf32> -> vector<8x384xf32>
    %12 = arith.addf %6, %11 : vector<8x384xf32>
    %c2 = arith.constant 2 : index
    %c0_12 = arith.constant 0 : index
    %c0_13 = arith.constant 0 : index
    %13 = vector.load %arg2[%c2, %c0_12, %c0_13] : memref<9x8x4xf32, #tpu.memory_space<vmem>>, vector<1x8x4xf32>
    %14 = vector.shape_cast %13 : vector<1x8x4xf32> to vector<8x4xf32>
    %c0_14 = arith.constant 0 : index
    %c0_15 = arith.constant 0 : index
    %c2_16 = arith.constant 2 : index
    %15 = vector.load %arg1[%c0_14, %c0_15, %c2_16] : memref<1x4x512xf32, #tpu.memory_space<vmem>>, vector<1x4x384xf32>
    %16 = vector.shape_cast %15 : vector<1x4x384xf32> to vector<4x384xf32>
    %cst_17 = arith.constant dense<0.000000e+00> : vector<8x384xf32>
    %17 = tpu.matmul %14, %16, %cst_17 {dimension_numbers = #tpu.dot_dimension_numbers<[1], [0], [0], [1], [0, 0, 1, 1], [], []>} : vector<8x4xf32>, vector<4x384xf32>, vector<8x384xf32> -> vector<8x384xf32>
    %18 = arith.addf %12, %17 : vector<8x384xf32>
    %c3 = arith.constant 3 : index
    %c0_18 = arith.constant 0 : index
    %c0_19 = arith.constant 0 : index
    %19 = vector.load %arg2[%c3, %c0_18, %c0_19] : memref<9x8x4xf32, #tpu.memory_space<vmem>>, vector<1x8x4xf32>
    %20 = vector.shape_cast %19 : vector<1x8x4xf32> to vector<8x4xf32>
    %c0_20 = arith.constant 0 : index
    %c0_21 = arith.constant 0 : index
    %c18 = arith.constant 18 : index
    %21 = vector.load %arg1[%c0_20, %c0_21, %c18] : memref<1x4x512xf32, #tpu.memory_space<vmem>>, vector<1x4x384xf32>
    %22 = vector.shape_cast %21 : vector<1x4x384xf32> to vector<4x384xf32>
    %cst_22 = arith.constant dense<0.000000e+00> : vector<8x384xf32>
    %23 = tpu.matmul %20, %22, %cst_22 {dimension_numbers = #tpu.dot_dimension_numbers<[1], [0], [0], [1], [0, 0, 1, 1], [], []>} : vector<8x4xf32>, vector<4x384xf32>, vector<8x384xf32> -> vector<8x384xf32>
    %24 = arith.addf %18, %23 : vector<8x384xf32>
    %c4 = arith.constant 4 : index
    %c0_23 = arith.constant 0 : index
    %c0_24 = arith.constant 0 : index
    %25 = vector.load %arg2[%c4, %c0_23, %c0_24] : memref<9x8x4xf32, #tpu.memory_space<vmem>>, vector<1x8x4xf32>
    %26 = vector.shape_cast %25 : vector<1x8x4xf32> to vector<8x4xf32>
    %c0_25 = arith.constant 0 : index
    %c0_26 = arith.constant 0 : index
    %c19 = arith.constant 19 : index
    %27 = vector.load %arg1[%c0_25, %c0_26, %c19] : memref<1x4x512xf32, #tpu.memory_space<vmem>>, vector<1x4x384xf32>
    %28 = vector.shape_cast %27 : vector<1x4x384xf32> to vector<4x384xf32>
    %cst_27 = arith.constant dense<0.000000e+00> : vector<8x384xf32>
    %29 = tpu.matmul %26, %28, %cst_27 {dimension_numbers = #tpu.dot_dimension_numbers<[1], [0], [0], [1], [0, 0, 1, 1], [], []>} : vector<8x4xf32>, vector<4x384xf32>, vector<8x384xf32> -> vector<8x384xf32>
    %30 = arith.addf %24, %29 : vector<8x384xf32>
    %c5 = arith.constant 5 : index
    %c0_28 = arith.constant 0 : index
    %c0_29 = arith.constant 0 : index
    %31 = vector.load %arg2[%c5, %c0_28, %c0_29] : memref<9x8x4xf32, #tpu.memory_space<vmem>>, vector<1x8x4xf32>
    %32 = vector.shape_cast %31 : vector<1x8x4xf32> to vector<8x4xf32>
    %c0_30 = arith.constant 0 : index
    %c0_31 = arith.constant 0 : index
    %c20 = arith.constant 20 : index
    %33 = vector.load %arg1[%c0_30, %c0_31, %c20] : memref<1x4x512xf32, #tpu.memory_space<vmem>>, vector<1x4x384xf32>
    %34 = vector.shape_cast %33 : vector<1x4x384xf32> to vector<4x384xf32>
    %cst_32 = arith.constant dense<0.000000e+00> : vector<8x384xf32>
    %35 = tpu.matmul %32, %34, %cst_32 {dimension_numbers = #tpu.dot_dimension_numbers<[1], [0], [0], [1], [0, 0, 1, 1], [], []>} : vector<8x4xf32>, vector<4x384xf32>, vector<8x384xf32> -> vector<8x384xf32>
    %36 = arith.addf %30, %35 : vector<8x384xf32>
    %c6 = arith.constant 6 : index
    %c0_33 = arith.constant 0 : index
    %c0_34 = arith.constant 0 : index
    %37 = vector.load %arg2[%c6, %c0_33, %c0_34] : memref<9x8x4xf32, #tpu.memory_space<vmem>>, vector<1x8x4xf32>
    %38 = vector.shape_cast %37 : vector<1x8x4xf32> to vector<8x4xf32>
    %c0_35 = arith.constant 0 : index
    %c0_36 = arith.constant 0 : index
    %c36 = arith.constant 36 : index
    %39 = vector.load %arg1[%c0_35, %c0_36, %c36] : memref<1x4x512xf32, #tpu.memory_space<vmem>>, vector<1x4x384xf32>
    %40 = vector.shape_cast %39 : vector<1x4x384xf32> to vector<4x384xf32>
    %cst_37 = arith.constant dense<0.000000e+00> : vector<8x384xf32>
    %41 = tpu.matmul %38, %40, %cst_37 {dimension_numbers = #tpu.dot_dimension_numbers<[1], [0], [0], [1], [0, 0, 1, 1], [], []>} : vector<8x4xf32>, vector<4x384xf32>, vector<8x384xf32> -> vector<8x384xf32>
    %42 = arith.addf %36, %41 : vector<8x384xf32>
    %c7 = arith.constant 7 : index
    %c0_38 = arith.constant 0 : index
    %c0_39 = arith.constant 0 : index
    %43 = vector.load %arg2[%c7, %c0_38, %c0_39] : memref<9x8x4xf32, #tpu.memory_space<vmem>>, vector<1x8x4xf32>
    %44 = vector.shape_cast %43 : vector<1x8x4xf32> to vector<8x4xf32>
    %c0_40 = arith.constant 0 : index
    %c0_41 = arith.constant 0 : index
    %c37 = arith.constant 37 : index
    %45 = vector.load %arg1[%c0_40, %c0_41, %c37] : memref<1x4x512xf32, #tpu.memory_space<vmem>>, vector<1x4x384xf32>
    %46 = vector.shape_cast %45 : vector<1x4x384xf32> to vector<4x384xf32>
    %cst_42 = arith.constant dense<0.000000e+00> : vector<8x384xf32>
    %47 = tpu.matmul %44, %46, %cst_42 {dimension_numbers = #tpu.dot_dimension_numbers<[1], [0], [0], [1], [0, 0, 1, 1], [], []>} : vector<8x4xf32>, vector<4x384xf32>, vector<8x384xf32> -> vector<8x384xf32>
    %48 = arith.addf %42, %47 : vector<8x384xf32>
    %c8 = arith.constant 8 : index
    %c0_43 = arith.constant 0 : index
    %c0_44 = arith.constant 0 : index
    %49 = vector.load %arg2[%c8, %c0_43, %c0_44] : memref<9x8x4xf32, #tpu.memory_space<vmem>>, vector<1x8x4xf32>
    %50 = vector.shape_cast %49 : vector<1x8x4xf32> to vector<8x4xf32>
    %c0_45 = arith.constant 0 : index
    %c0_46 = arith.constant 0 : index
    %c38 = arith.constant 38 : index
    %51 = vector.load %arg1[%c0_45, %c0_46, %c38] : memref<1x4x512xf32, #tpu.memory_space<vmem>>, vector<1x4x384xf32>
    %52 = vector.shape_cast %51 : vector<1x4x384xf32> to vector<4x384xf32>
    %cst_47 = arith.constant dense<0.000000e+00> : vector<8x384xf32>
    %53 = tpu.matmul %50, %52, %cst_47 {dimension_numbers = #tpu.dot_dimension_numbers<[1], [0], [0], [1], [0, 0, 1, 1], [], []>} : vector<8x4xf32>, vector<4x384xf32>, vector<8x384xf32> -> vector<8x384xf32>
    %54 = arith.addf %48, %53 : vector<8x384xf32>
    %c0_48 = arith.constant 0 : index
    %c0_49 = arith.constant 0 : index
    %c0_50 = arith.constant 0 : index
    %55 = vector.load %arg4[%c0_48, %c0_49, %c0_50] : memref<1x8x384xf32, #tpu.memory_space<vmem>>, vector<1x8x384xf32>
    %56 = vector.shape_cast %55 : vector<1x8x384xf32> to vector<8x384xf32>
    %57 = vector.shape_cast %54 : vector<8x384xf32> to vector<1x8x384xf32>
    tpu.vector_store %arg4[%c0_48, %c0_49, %c0_50], %57 {strides = array<i32>} : memref<1x8x384xf32, #tpu.memory_space<vmem>>, vector<1x8x384xf32>,
    %c0_51 = arith.constant 0 : index
    %c0_52 = arith.constant 0 : index
    %58 = vector.load %arg3[%c0_51, %c0_52] : memref<384x1xf32, #tpu.memory_space<vmem>>, vector<384x1xf32>
    %cst_53 = arith.constant dense<0.000000e+00> : vector<8x1xf32>
    %59 = tpu.matmul %54, %58, %cst_53 {dimension_numbers = #tpu.dot_dimension_numbers<[1], [0], [0], [1], [0, 0, 1, 1], [], []>} : vector<8x384xf32>, vector<384x1xf32>, vector<8x1xf32> -> vector<8x1xf32>
    %c0_54 = arith.constant 0 : index
    %c0_55 = arith.constant 0 : index
    %c0_56 = arith.constant 0 : index
    %60 = vector.load %arg5[%c0_54, %c0_55, %c0_56] : memref<1x8x1xf32, #tpu.memory_space<vmem>>, vector<1x8x1xf32>
    %61 = vector.shape_cast %60 : vector<1x8x1xf32> to vector<8x1xf32>
    %62 = vector.shape_cast %59 : vector<8x1xf32> to vector<1x8x1xf32>
    tpu.vector_store %arg5[%c0_54, %c0_55, %c0_56], %62 {strides = array<i32>} : memref<1x8x1xf32, #tpu.memory_space<vmem>>, vector<1x8x1xf32>,
    %63 = arith.mulf %54, %54 : vector<8x384xf32>
    %c0_57 = arith.constant 0 : index
    %c0_58 = arith.constant 0 : index
    %64 = vector.load %arg3[%c0_57, %c0_58] : memref<384x1xf32, #tpu.memory_space<vmem>>, vector<384x1xf32>
    %cst_59 = arith.constant dense<0.000000e+00> : vector<8x1xf32>
    %65 = tpu.matmul %63, %64, %cst_59 {dimension_numbers = #tpu.dot_dimension_numbers<[1], [0], [0], [1], [0, 0, 1, 1], [], []>} : vector<8x384xf32>, vector<384x1xf32>, vector<8x1xf32> -> vector<8x1xf32>
    %c0_60 = arith.constant 0 : index
    %c0_61 = arith.constant 0 : index
    %c0_62 = arith.constant 0 : index
    %66 = vector.load %arg6[%c0_60, %c0_61, %c0_62] : memref<1x8x1xf32, #tpu.memory_space<vmem>>, vector<1x8x1xf32>
    %67 = vector.shape_cast %66 : vector<1x8x1xf32> to vector<8x1xf32>
    %68 = vector.shape_cast %65 : vector<8x1xf32> to vector<1x8x1xf32>
    tpu.vector_store %arg6[%c0_60, %c0_61, %c0_62], %68 {strides = array<i32>} : memref<1x8x1xf32, #tpu.memory_space<vmem>>, vector<1x8x1xf32>,
    return
  }
  func.func @transform_0(%arg0: i32) -> (i32, i32, i32) {
    %c0_i32 = arith.constant 0 : i32
    %c0_i32_0 = arith.constant 0 : i32
    %c0_i32_1 = arith.constant 0 : i32
    return %arg0, %c0_i32, %c0_i32_0 : i32, i32, i32
  }
  func.func @transform_1(%arg0: i32) -> (i32, i32, i32) {
    %c0_i32 = arith.constant 0 : i32
    %c0_i32_0 = arith.constant 0 : i32
    %c0_i32_1 = arith.constant 0 : i32
    %c0_i32_2 = arith.constant 0 : i32
    return %c0_i32, %c0_i32_0, %c0_i32_1 : i32, i32, i32
  }
  func.func @transform_2(%arg0: i32) -> (i32, i32) {
    %c0_i32 = arith.constant 0 : i32
    %c0_i32_0 = arith.constant 0 : i32
    %c0_i32_1 = arith.constant 0 : i32
    return %c0_i32, %c0_i32_0 : i32, i32
  }
  func.func @transform_3(%arg0: i32) -> (i32, i32, i32) {
    %c0_i32 = arith.constant 0 : i32
    %c0_i32_0 = arith.constant 0 : i32
    %c0_i32_1 = arith.constant 0 : i32
    return %arg0, %c0_i32, %c0_i32_0 : i32, i32, i32
  }
  func.func @transform_4(%arg0: i32) -> (i32, i32, i32) {
    %c0_i32 = arith.constant 0 : i32
    %c0_i32_0 = arith.constant 0 : i32
    %c0_i32_1 = arith.constant 0 : i32
    return %arg0, %c0_i32, %c0_i32_0 : i32, i32, i32
  }
  func.func @transform_5(%arg0: i32) -> (i32, i32, i32) {
    %c0_i32 = arith.constant 0 : i32
    %c0_i32_0 = arith.constant 0 : i32
    %c0_i32_1 = arith.constant 0 : i32
    return %arg0, %c0_i32, %c0_i32_0 : i32, i32, i32
  }
}

module attributes {stable_mosaic.version = 11 : i64} {
  func.func @bn_lrelu_kernel(%arg0: i32, %arg1: memref<1x8x384xf32, #tpu.memory_space<vmem>>, %arg2: memref<8x1xf32, #tpu.memory_space<vmem>>, %arg3: memref<8x1xf32, #tpu.memory_space<vmem>>, %arg4: memref<1x8x384xf32, #tpu.memory_space<vmem>>) attributes {dimension_semantics = [#tpu.dimension_semantics<parallel>], iteration_bounds = array<i64: 2>, scalar_prefetch = 0 : i64, scratch_operands = 0 : i64, tpu.core_type = #tpu.core_type<tc>, window_params = [{transform_indices = @transform_0, window_bounds = array<i64: 1, 8, 384>}, {pipeline_mode = #tpu.pipeline_mode<synchronous>, transform_indices = @transform_1, window_bounds = array<i64: 8, 1>}, {pipeline_mode = #tpu.pipeline_mode<synchronous>, transform_indices = @transform_2, window_bounds = array<i64: 8, 1>}, {transform_indices = @transform_3, window_bounds = array<i64: 1, 8, 384>}]} {
    %c0 = arith.constant 0 : index
    %c0_0 = arith.constant 0 : index
    %c0_1 = arith.constant 0 : index
    %0 = vector.load %arg1[%c0, %c0_0, %c0_1] : memref<1x8x384xf32, #tpu.memory_space<vmem>>, vector<1x8x384xf32>
    %1 = vector.shape_cast %0 : vector<1x8x384xf32> to vector<8x384xf32>
    %c0_2 = arith.constant 0 : index
    %c0_3 = arith.constant 0 : index
    %2 = vector.load %arg2[%c0_2, %c0_3] : memref<8x1xf32, #tpu.memory_space<vmem>>, vector<8x1xf32>
    %3 = vector.broadcast %2 : vector<8x1xf32> to vector<8x384xf32>
    %4 = arith.mulf %1, %3 : vector<8x384xf32>
    %c0_4 = arith.constant 0 : index
    %c0_5 = arith.constant 0 : index
    %5 = vector.load %arg3[%c0_4, %c0_5] : memref<8x1xf32, #tpu.memory_space<vmem>>, vector<8x1xf32>
    %6 = vector.broadcast %5 : vector<8x1xf32> to vector<8x384xf32>
    %7 = arith.addf %4, %6 : vector<8x384xf32>
    %cst = arith.constant 0.000000e+00 : f32
    %8 = vector.broadcast %cst : f32 to vector<8x384xf32>
    %9 = arith.cmpf ogt, %7, %8 : vector<8x384xf32>
    %cst_6 = arith.constant 1.000000e-01 : f32
    %10 = vector.broadcast %cst_6 : f32 to vector<8x384xf32>
    %11 = arith.mulf %10, %7 : vector<8x384xf32>
    %12 = arith.select %9, %7, %11 : vector<8x384xi1>, vector<8x384xf32>
    %c0_7 = arith.constant 0 : index
    %c0_8 = arith.constant 0 : index
    %c0_9 = arith.constant 0 : index
    %13 = vector.load %arg4[%c0_7, %c0_8, %c0_9] : memref<1x8x384xf32, #tpu.memory_space<vmem>>, vector<1x8x384xf32>
    %14 = vector.shape_cast %13 : vector<1x8x384xf32> to vector<8x384xf32>
    %15 = vector.shape_cast %12 : vector<8x384xf32> to vector<1x8x384xf32>
    tpu.vector_store %arg4[%c0_7, %c0_8, %c0_9], %15 {strides = array<i32>} : memref<1x8x384xf32, #tpu.memory_space<vmem>>, vector<1x8x384xf32>,
    return
  }
  func.func @transform_0(%arg0: i32) -> (i32, i32, i32) {
    %c0_i32 = arith.constant 0 : i32
    %c0_i32_0 = arith.constant 0 : i32
    %c0_i32_1 = arith.constant 0 : i32
    return %arg0, %c0_i32, %c0_i32_0 : i32, i32, i32
  }
  func.func @transform_1(%arg0: i32) -> (i32, i32) {
    %c0_i32 = arith.constant 0 : i32
    %c0_i32_0 = arith.constant 0 : i32
    %c0_i32_1 = arith.constant 0 : i32
    return %c0_i32, %c0_i32_0 : i32, i32
  }
  func.func @transform_2(%arg0: i32) -> (i32, i32) {
    %c0_i32 = arith.constant 0 : i32
    %c0_i32_0 = arith.constant 0 : i32
    %c0_i32_1 = arith.constant 0 : i32
    return %c0_i32, %c0_i32_0 : i32, i32
  }
  func.func @transform_3(%arg0: i32) -> (i32, i32, i32) {
    %c0_i32 = arith.constant 0 : i32
    %c0_i32_0 = arith.constant 0 : i32
    %c0_i32_1 = arith.constant 0 : i32
    return %arg0, %c0_i32, %c0_i32_0 : i32, i32, i32
  }
}

</mosaic_0001>

<bundles_post_ra>
// kernel: conv_block.3
= control target key start
LH: loop header
LB: loop body
LE: loop exit
PB: predicated region body
PF: predicated region fallthrough
CT: control target
= control target key end

     0   :  { %s308_s12 = smov 0   ;;  %s331_s0 = inlined_call_operand.vmem [shape: f32[2,8,384], index: 0, kind: input, shape index: {}]   ;;  %s332_s1 = inlined_call_operand.vmem [shape: f32[8,1], index: 1, kind: input, shape index: {}]   ;;  %s333_s2 = inlined_call_operand.vmem [shape: f32[8,1], index: 2, kind: input, shape index: {}]   ;;  %s334_s3 = inlined_call_operand.vmem [shape: f32[2,8,384], index: 3, kind: output, shape index: {}]  }
   0x1 LB: > { %s259_s13 = sadd.s32 4294967295, %s285_s12   ;;  %p263_p0 = scmp.ge.s32.totalorder %s285_s12, 1  ;;  %s285_s12 = sphi %s308_s12, %s13_s12  }
   0x2   : > { %p137_p1 = scmp.lt.s32.totalorder %s285_s12, 3 }
   0x4   : > { %p138_p2 = pnand %p263_p0, %p137_p1 }
   0x5   : > { %v174_v0 = vld [vmem:[%s332_s1] sm:$0xff] (!%p138_p2)  ;;  %v287_v1 = vmov (!%p138_p2), 0   ;;  %p161_p3 = scmp.lt.s32.totalorder (!%p138_p2), %s259_s13, 1 }
   0x6   : > { %141 = sbr.rel (%p138_p2) target bundleno = 146 (0x92), region = 32  ;;  %278 = vset.pattern.permute.xlu0 (!%p138_p2), %v287_v1  ;;  %v183_v2 = vld [vmem:[%s333_s2] sm:$0xff] (!%p138_p2) }
   0x7   : > { %177 = vperm.xlu0 (!%p138_p2), %278, %v174_v0  }
   0xb   : > { %186 = vperm.xlu0 (!%p138_p2), %278, %v183_v2  }
   0xd   : > { %s336_s13 = smov (!%p161_p3, %s259_s13), 1 }
   0xe   : > { %s268_s18 = smul.u32 24, %s336_s13 }
  0x10   : > { %s165_s21 = scalar_lea.vmem %s331_s0, %s268_s18  ;;  %s170_s24 = scalar_lea.vmem %s334_s3, %s268_s18 }
  0x11   : > { %v171_v4 = vld [vmem:[%s165_s21] sm:$0xff]  ;;  %v172_v5 = vld [vmem:[%s165_s21 + $0x8] sm:$0xff]  ;;  %v173_v6 = vld [vmem:[%s165_s21 + $0x10] sm:$0xff] }
  0x86   : > { %v178_v3 = vpop.permute.xlu0 %177 }
  0x87   : > { %v180_v7 = vmul.f32 %v178_v3, %v171_v4  ;;  %v181_v8 = vmul.f32 %v178_v3, %v172_v5  ;;  %v182_v9 = vmul.f32 %v178_v3, %v173_v6 }
  0x8a   : > { %v187_v10 = vpop.permute.xlu0 %186 }
  0x8b   : > { %v189_v11 = vadd.f32 %v187_v10, %v180_v7  ;;  %v190_v12 = vadd.f32 %v187_v10, %v181_v8  ;;  %v191_v13 = vadd.f32 %v187_v10, %v182_v9 }
  0x8d   : > { %vm192_vm0 = vcmp.gt.f32.partialorder %v189_v11, 0.0  ;;  %vm193_vm1 = vcmp.gt.f32.partialorder %v190_v12, 0.0  ;;  %vm194_vm2 = vcmp.gt.f32.partialorder %v191_v13, 0.0  ;;  %v195_v14 = vmul.f32 0.1, %v189_v11 }
  0x8e   : > { %v196_v15 = vmul.f32 0.1, %v190_v12  ;;  %v197_v16 = vmul.f32 0.1, %v191_v13 }
  0x8f   : > { %v198_v17 = vsel %vm192_vm0, %v189_v11, %v195_v14 }
  0x90   : > { %v199_v18 = vsel %vm193_vm1, %v190_v12, %v196_v15  ;;  %v200_v19 = vsel %vm194_vm2, %v191_v13, %v197_v16  ;;  %201 = vst [vmem:[%s170_s24] sm:$0xff] %v198_v17 }
  0x91   : > { %202 = vst [vmem:[%s170_s24 + $0x8] sm:$0xff] %v199_v18  ;;  %203 = vst [vmem:[%s170_s24 + $0x10] sm:$0xff] %v200_v19 }
  0x92 PF: > { %s13_s12 = sadd.s32 1, %s285_s12  }
  0x93   : > { %p10_p4 = scmp.ge.s32.totalorder %s13_s12, 4  }
  0x95   :  { %12 = sbr.rel (!%p10_p4) target bundleno = 1 (0x1), region = 62 }

// kernel: conv_block.2
= control target key start
LH: loop header
LB: loop body
LE: loop exit
PB: predicated region body
PF: predicated region fallthrough
CT: control target
= control target key end

     0   :  { %s2805_s18 = smov 0   ;;  %s3220_s0 = inlined_call_operand.vmem [shape: f32[2,4,512], index: 0, kind: input, shape index: {}]   ;;  %s3221_s1 = inlined_call_operand.vmem [shape: f32[9,8,4], index: 1, kind: input, shape index: {}]   ;;  %s3222_s2 = inlined_call_operand.vmem [shape: f32[384,1], index: 2, kind: input, shape index: {}]   ;;  %s3223_s3 = inlined_call_operand.vmem [shape: f32[2,8,384], index: 3, kind: output, shape index: {0}]   ;;  %s3224_s4 = inlined_call_operand.vmem [shape: f32[2,8,1], index: 4, kind: output, shape index: {1}]   ;;  %s3225_s5 = inlined_call_operand.vmem [shape: f32[2,8,1], index: 5, kind: output, shape index: {2}]  }
   0x1 LB: > { %s2287_s19 = sadd.s32 4294967295, %s2762_s18   ;;  %p2291_p0 = scmp.ge.s32.totalorder %s2762_s18, 1  ;;  %s2762_s18 = sphi %s2805_s18, %s16_s18  }
   0x2   : > { %p192_p1 = scmp.lt.s32.totalorder %s2762_s18, 3 }
   0x4   : > { %p193_p2 = pnand %p2291_p0, %p192_p1 }
   0x5   : > { %p228_p3 = scmp.lt.s32.totalorder (!%p193_p2), %s2287_s19, 1  ;;  %v2764_v0 = vmov (!%p193_p2), 0.0   ;;  %vm2765_vm0 = vmmov (!%p193_p2), 0   ;;  %s2766_s24 = smov (!%p193_p2), 127   ;;  %vm265_vm1 = vcmask (!%p193_p2), 1039360   ;;  %vm273_vm2 = vcmask (!%p193_p2), 1043456  }
   0x6   : > { %196 = sbr.rel (%p193_p2) target bundleno = 669 (0x29d), region = 32  ;;  %2475 = vmatprep.subr.mxu1 (!%p193_p2), %v2764_v0  ;;  %2477 = vmatprep.mubr.msk.f32.mxu1 (!%p193_p2), %vm2765_vm0, %v2764_v0  ;;  %s2767_s25 = smov (!%p193_p2), 126   ;;  %v2297_v9 = vld [vmem:[%s3221_s1 + $0x8] sm:$0xff] (!%p193_p2)  ;;  %vm269_vm3 = vcmask (!%p193_p2), 31744   ;;  %vm590_vm4 = vcmask (!%p193_p2), 1031168   ;;  %v246_v19 = vld [vmem:[%s3221_s1] sm:$0xff] (!%p193_p2) }
   0x7   : > { %344 = vmatprep.mubr.f32.mxu0 (!%p193_p2), %v2764_v0  ;;  %s2768_s26 = smov (!%p193_p2), 110   ;;  %s2769_s27 = smov (!%p193_p2), 109   ;;  %vm763_vm5 = vcmask (!%p193_p2), 900096   ;;  %v2308_v27 = vld [vmem:[%s3221_s1 + $0x10] sm:$0xff] (!%p193_p2)  ;;  %vm936_vm6 = vcmask (!%p193_p2), 891904   ;;  %v2314_v35 = vld [vmem:[%s3221_s1 + $0x18] sm:$0xff] (!%p193_p2) }
   0x8   : > { %s2770_s28 = smov (!%p193_p2), 108   ;;  %s2771_s29 = smov (!%p193_p2), 92   ;;  %vm1109_vm7 = vcmask (!%p193_p2), 883712   ;;  %v2320_v43 = vld [vmem:[%s3221_s1 + $0x20] sm:$0xff] (!%p193_p2)  ;;  %vm1282_vm8 = vcmask (!%p193_p2), 752640   ;;  %v2326_v51 = vld [vmem:[%s3221_s1 + $0x28] sm:$0xff] (!%p193_p2) }
   0x9   : > { %s2772_s30 = smov (!%p193_p2), 91   ;;  %s2773_s6 = smov (!%p193_p2), 90   ;;  %vm1455_vm9 = vcmask (!%p193_p2), 744448   ;;  %v2332_v59 = vld [vmem:[%s3221_s1 + $0x30] sm:$0xff] (!%p193_p2)  ;;  %vm1628_vm10 = vcmask (!%p193_p2), 736256   ;;  %vm1976_vm11 = vcmask (!%p193_p2), 7168  }
   0xd   : > { %s3227_s19 = smov (!%p228_p3, %s2287_s19), 1 }
   0xe   : > { %s2352_s20 = sshll.u32 %s3227_s19, 4  ;;  %s2295_s10 = sshll.u32 %s3227_s19, 3 }
   0xf   : > { %s2823_s23 = scalar_lea.vmem %s3220_s0, %s2352_s20  ;;  %s241_s13 = scalar_lea.vmem %s3224_s4, %s2295_s10 }
  0x10   : > { %v2826_v1 = vld [vmem:[%s2823_s23] sm:$0xff]  ;;  %v252_v2 = vld [vmem:[%s2823_s23 + $0x8] sm:$0xff]  ;;  %s245_s16 = scalar_lea.vmem %s3225_s5, %s2295_s10 }
  0x11   : > { %257 = vrot.lane.b32.xlu1 %v2826_v1, %s2766_s24  ;;  %v255_v3 = vcombine.high %v2826_v1, %v2826_v1  ;;  %v256_v4 = vcombine.high %v252_v2, %v252_v2  ;;  %v248_v14 = vld [vmem:[%s2823_s23 + $0x8] sm:$0xf] }
  0x13   : > { %259 = vrot.lane.b32.xlu0 %v255_v3, %s2766_s24 }
  0x15   : > { %263 = vrot.lane.b32.xlu1 %v256_v4, %s2766_s24 }
  0x17   : > { %261 = vrot.lane.b32.xlu0 %v252_v2, %s2766_s24 }
  0x19   : > { %586 = vrot.lane.b32.xlu1 %v252_v2, %s2767_s25 }
  0x1b   : > { %584 = vrot.lane.b32.xlu0 %v255_v3, %s2767_s25 }
  0x1d   : > { %588 = vrot.lane.b32.xlu1 %v256_v4, %s2767_s25 }
  0x1f   : > { %582 = vrot.lane.b32.xlu0 %v2826_v1, %s2767_s25 }
  0x21   : > { %759 = vrot.lane.b32.xlu1 %v252_v2, %s2768_s26 }
  0x23   : > { %757 = vrot.lane.b32.xlu0 %v255_v3, %s2768_s26 }
  0x25   : > { %761 = vrot.lane.b32.xlu1 %v256_v4, %s2768_s26 }
  0x27   : > { %755 = vrot.lane.b32.xlu0 %v2826_v1, %s2768_s26 }
  0x29   : > { %932 = vrot.lane.b32.xlu1 %v252_v2, %s2769_s27 }
  0x2b   : > { %930 = vrot.lane.b32.xlu0 %v255_v3, %s2769_s27 }
  0x2d   : > { %934 = vrot.lane.b32.xlu1 %v256_v4, %s2769_s27 }
  0x2f   : > { %928 = vrot.lane.b32.xlu0 %v2826_v1, %s2769_s27 }
  0x31   : > { %1105 = vrot.lane.b32.xlu1 %v252_v2, %s2770_s28 }
  0x33   : > { %1103 = vrot.lane.b32.xlu0 %v255_v3, %s2770_s28 }
  0x35   : > { %1107 = vrot.lane.b32.xlu1 %v256_v4, %s2770_s28 }
  0x37   : > { %1101 = vrot.lane.b32.xlu0 %v2826_v1, %s2770_s28 }
  0x39   : > { %1278 = vrot.lane.b32.xlu1 %v252_v2, %s2771_s29 }
  0x3b   : > { %1276 = vrot.lane.b32.xlu0 %v255_v3, %s2771_s29 }
  0x3d   : > { %1280 = vrot.lane.b32.xlu1 %v256_v4, %s2771_s29 }
  0x3f   : > { %1274 = vrot.lane.b32.xlu0 %v2826_v1, %s2771_s29 }
  0x41   : > { %1451 = vrot.lane.b32.xlu1 %v252_v2, %s2772_s30 }
  0x43   : > { %1449 = vrot.lane.b32.xlu0 %v255_v3, %s2772_s30 }
  0x45   : > { %1453 = vrot.lane.b32.xlu1 %v256_v4, %s2772_s30 }
  0x47   : > { %1447 = vrot.lane.b32.xlu0 %v2826_v1, %s2772_s30 }
  0x49   : > { %1624 = vrot.lane.b32.xlu1 %v252_v2, %s2773_s6 }
  0x4b   : > { %1622 = vrot.lane.b32.xlu0 %v255_v3, %s2773_s6 }
  0x4d   : > { %1626 = vrot.lane.b32.xlu1 %v256_v4, %s2773_s6  ;;  %v2338_v4 = vld [vmem:[%s3221_s1 + $0x38] sm:$0xff] }
  0x4f   : > { %1620 = vrot.lane.b32.xlu0 %v2826_v1, %s2773_s6  ;;  %s2734_s6 = smul.u32 24, %s3227_s19 }
  0x51   : > { %s237_s9 = scalar_lea.vmem %s3223_s3, %s2734_s6 }
  0x83   : > { %v258_v5 = vpop.permute.xlu1 %257 }
  0x85   : > { %v260_v6 = vpop.permute.xlu0 %259 }
  0x86   : > { %v266_v12 = vsel %vm265_vm1, %v258_v5, %v260_v6  ;;  %v1804_v5 = vld [vmem:[%s3222_s2 + $0x80] sm:$0xff] }
  0x87   : > { %v264_v7 = vpop.permute.xlu1 %263 }
  0x89   : > { %v262_v8 = vpop.permute.xlu0 %261 }
  0x8a   : > { %v267_v10 = vsel %vm265_vm1, %v260_v6, %v262_v8  ;;  %v268_v11 = vsel %vm265_vm1, %v262_v8, %v264_v7  ;;  %v1805_v6 = vld [vmem:[%s3222_s2 + $0x88] sm:$0xff] }
  0x8b   : > { %2298 = vmatprep.subr.msk.mxu0 %vm273_vm2, %v267_v10  ;;  %2476 = vmatpush3.msk.msra.mxu1 %vm273_vm2, %v268_v11  ;;  %v587_v13 = vpop.permute.xlu1 %586  ;;  %v1820_v10 = vld [vmem:[%s3222_s2 + $0x100] sm:$0xff]  ;;  %v1821_v11 = vld [vmem:[%s3222_s2 + $0x108] sm:$0xff] }
  0x8c   : > { %2299 = vmatpush1.msk.msra.mxu0 %vm273_vm2, %v266_v12  ;;  %2478 = vmatmul.mubr.msk.f32.vlgmr.msra.gmra.mrb[0].mxu1 %vm269_vm3, %v2297_v9  ;;  %v2774_v12 = vmov 0.0|0.0  }
  0x8d   : > { %2300 = vmatmul.mubr.msk.f32.vlgmr.msra.gmra.mrb[0].mxu0 %vm269_vm3, %v2297_v9  ;;  %v585_v15 = vpop.permute.xlu0 %584  ;;  %2303 = vmatprep.subr.msk.mxu0 %vm273_vm2, %v255_v3  ;;  %v2961_v9 = vpack.c.bf16 %v1805_v6, %v1804_v5  ;;  %v1800_v5 = vld [vmem:[%s3222_s2 + $0x60] sm:$0xff]  ;;  %v1801_v6 = vld [vmem:[%s3222_s2 + $0x68] sm:$0xff] }
  0x8e   : > { %2304 = vmatpush1.msk.msra.mxu0 %vm273_vm2, %v2826_v1  ;;  %v592_v16 = vsel %vm590_vm4, %v585_v15, %v587_v13  ;;  %2480 = vmatprep.subr.mxu1 %v2764_v0 }
  0x8f   : > { %2309 = vmatprep.subr.msk.mxu0 %vm273_vm2, %v592_v16  ;;  %v589_v17 = vpop.permute.xlu1 %588  ;;  %2481 = vmatpush3.msk.msra.mxu1 %vm273_vm2, %v248_v14  ;;  %v1789_v14 = vld [vmem:[%s3222_s2 + $0x8] sm:$0xff]  ;;  %v1807_v16 = vld [vmem:[%s3222_s2 + $0x98] sm:$0xff] }
  0x90   : > { %2482 = vmatprep.mubr.msk.f32.mxu1 %vm2765_vm0, %v2764_v0  ;;  %497 = vmatprep.mubr.f32.mxu0 %v2764_v0  ;;  %v593_v20 = vsel %vm590_vm4, %v587_v13, %v589_v17  ;;  %v1788_v13 = vld [vmem:[%s3222_s2] sm:$0xff] }
  0x91   : > { %v583_v18 = vpop.permute.xlu0 %582  ;;  %2485 = vmatprep.subr.mxu1 %v2764_v0  ;;  %v2344_v17 = vld [vmem:[%s3221_s1 + $0x40] sm:$0xff] }
  0x92   : > { %v591_v21 = vsel %vm590_vm4, %v583_v18, %v585_v15  ;;  %v1806_v15 = vld [vmem:[%s3222_s2 + $0x90] sm:$0xff]  ;;  %v2992_v18 = vpack.c.bf16 %v1821_v11, %v1820_v10  ;;  %v2616_v11 = vpack.c.bf16 %v1801_v6, %v1800_v5 }
  0x93   : > { %v760_v22 = vpop.permute.xlu1 %759 }
  0x94   : > { %2483 = vmatmul.mubr.msk.f32.vlgmr.msra.gmra.mrb[0].mxu1 %vm269_vm3, %v246_v19 }
  0x95   : > { %v758_v23 = vpop.permute.xlu0 %757  ;;  %2305 = vmatmul.mubr.msk.f32.vlgmr.msra.gmra.mrb[0].mxu0 %vm269_vm3, %v246_v19  ;;  %2486 = vmatpush3.msk.msra.mxu1 %vm273_vm2, %v593_v20  ;;  %v2994_v19 = vpack.c.bf16 %v1789_v14, %v1788_v13  ;;  %v1822_v20 = vld [vmem:[%s3222_s2 + $0x110] sm:$0xff]  ;;  %v1835_v14 = vld [vmem:[%s3222_s2 + $0x178] sm:$0xff] }
  0x96   : > { %2310 = vmatpush1.msk.msra.mxu0 %vm273_vm2, %v591_v21  ;;  %v765_v24 = vsel %vm763_vm5, %v758_v23, %v760_v22  ;;  %2487 = vmatprep.mubr.msk.f32.mxu1 %vm2765_vm0, %v2764_v0  ;;  %v1823_v21 = vld [vmem:[%s3222_s2 + $0x118] sm:$0xff]  ;;  %v1834_v13 = vld [vmem:[%s3222_s2 + $0x170] sm:$0xff] }
  0x97   : > { %2315 = vmatprep.subr.msk.mxu0 %vm273_vm2, %v765_v24  ;;  %v762_v25 = vpop.permute.xlu1 %761  ;;  %667 = vmatprep.mubr.f32.mxu0 %v2764_v0  ;;  %v1791_v24 = vld [vmem:[%s3222_s2 + $0x18] sm:$0xff] }
  0x98   : > { %2490 = vmatprep.subr.mxu1 %v2764_v0  ;;  %v766_v28 = vsel %vm763_vm5, %v760_v22, %v762_v25  ;;  %v3002_v22 = vpack.c.bf16 %v1807_v16, %v1806_v15  ;;  %v1808_v25 = vld [vmem:[%s3222_s2 + $0xa0] sm:$0xff]  ;;  %v2644_v16 = vpack.c.bf16 %v1835_v14, %v1834_v13 }
  0x99   : > { %v756_v26 = vpop.permute.xlu0 %755 }
  0x9a   : > { %v764_v29 = vsel %vm763_vm5, %v756_v26, %v758_v23  ;;  %v1790_v23 = vld [vmem:[%s3222_s2 + $0x10] sm:$0xff]  ;;  %v1809_v26 = vld [vmem:[%s3222_s2 + $0xa8] sm:$0xff] }
  0x9b   : > { %v933_v30 = vpop.permute.xlu1 %932 }
  0x9c   : > { %2488 = vmatmul.mubr.msk.f32.vlgmr.msra.gmra.mrb[0].mxu1 %vm269_vm3, %v2308_v27 }
  0x9d   : > { %v931_v31 = vpop.permute.xlu0 %930  ;;  %2311 = vmatmul.mubr.msk.f32.vlgmr.msra.gmra.mrb[0].mxu0 %vm269_vm3, %v2308_v27  ;;  %2491 = vmatpush3.msk.msra.mxu1 %vm273_vm2, %v766_v28  ;;  %v3019_v27 = vpack.c.bf16 %v1823_v21, %v1822_v20  ;;  %v3023_v28 = vpack.c.bf16 %v1791_v24, %v1790_v23  ;;  %v1803_v20 = vld [vmem:[%s3222_s2 + $0x78] sm:$0xff] }
  0x9e   : > { %2316 = vmatpush1.msk.msra.mxu0 %vm273_vm2, %v764_v29  ;;  %v938_v32 = vsel %vm936_vm6, %v931_v31, %v933_v30  ;;  %2492 = vmatprep.mubr.msk.f32.mxu1 %vm2765_vm0, %v2764_v0  ;;  %v1824_v29 = vld [vmem:[%s3222_s2 + $0x120] sm:$0xff] }
  0x9f   : > { %2321 = vmatprep.subr.msk.mxu0 %vm273_vm2, %v938_v32  ;;  %v935_v33 = vpop.permute.xlu1 %934  ;;  %840 = vmatprep.mubr.f32.mxu0 %v2764_v0  ;;  %v1792_v32 = vld [vmem:[%s3222_s2 + $0x20] sm:$0xff] }
  0xa0   : > { %2495 = vmatprep.subr.mxu1 %v2764_v0  ;;  %v939_v36 = vsel %vm936_vm6, %v933_v30, %v935_v33  ;;  %v1825_v30 = vld [vmem:[%s3222_s2 + $0x128] sm:$0xff] }
  0xa1   : > { %v929_v34 = vpop.permute.xlu0 %928  ;;  %v1793_v33 = vld [vmem:[%s3222_s2 + $0x28] sm:$0xff] }
  0xa2   : > { %v937_v37 = vsel %vm936_vm6, %v929_v34, %v931_v31  ;;  %v3032_v31 = vpack.c.bf16 %v1809_v26, %v1808_v25  ;;  %v1810_v34 = vld [vmem:[%s3222_s2 + $0xb0] sm:$0xff] }
  0xa3   : > { %v1106_v38 = vpop.permute.xlu1 %1105 }
  0xa4   : > { %2493 = vmatmul.mubr.msk.f32.vlgmr.msra.gmra.mrb[0].mxu1 %vm269_vm3, %v2314_v35 }
  0xa5   : > { %v1104_v39 = vpop.permute.xlu0 %1103  ;;  %2317 = vmatmul.mubr.msk.f32.vlgmr.msra.gmra.mrb[0].mxu0 %vm269_vm3, %v2314_v35  ;;  %2496 = vmatpush3.msk.msra.mxu1 %vm273_vm2, %v939_v36  ;;  %v1811_v35 = vld [vmem:[%s3222_s2 + $0xb8] sm:$0xff]  ;;  %v3049_v36 = vpack.c.bf16 %v1825_v30, %v1824_v29 }
  0xa6   : > { %2322 = vmatpush1.msk.msra.mxu0 %vm273_vm2, %v937_v37  ;;  %v1111_v40 = vsel %vm1109_vm7, %v1104_v39, %v1106_v38  ;;  %2497 = vmatprep.mubr.msk.f32.mxu1 %vm2765_vm0, %v2764_v0  ;;  %v3053_v37 = vpack.c.bf16 %v1793_v33, %v1792_v32 }
  0xa7   : > { %2327 = vmatprep.subr.msk.mxu0 %vm273_vm2, %v1111_v40  ;;  %v1108_v41 = vpop.permute.xlu1 %1107  ;;  %1013 = vmatprep.mubr.f32.mxu0 %v2764_v0  ;;  %v3062_v40 = vpack.c.bf16 %v1811_v35, %v1810_v34 }
  0xa8   : > { %2500 = vmatprep.subr.mxu1 %v2764_v0  ;;  %v1112_v44 = vsel %vm1109_vm7, %v1106_v38, %v1108_v41  ;;  %v1826_v38 = vld [vmem:[%s3222_s2 + $0x130] sm:$0xff] }
  0xa9   : > { %v1102_v42 = vpop.permute.xlu0 %1101  ;;  %v1794_v41 = vld [vmem:[%s3222_s2 + $0x30] sm:$0xff] }
  0xaa   : > { %v1110_v45 = vsel %vm1109_vm7, %v1102_v42, %v1104_v39  ;;  %v1827_v39 = vld [vmem:[%s3222_s2 + $0x138] sm:$0xff] }
  0xab   : > { %v1279_v46 = vpop.permute.xlu1 %1278  ;;  %v1795_v42 = vld [vmem:[%s3222_s2 + $0x38] sm:$0xff] }
  0xac   : > { %2498 = vmatmul.mubr.msk.f32.vlgmr.msra.gmra.mrb[0].mxu1 %vm269_vm3, %v2320_v43 }
  0xad   : > { %v1277_v47 = vpop.permute.xlu0 %1276  ;;  %2323 = vmatmul.mubr.msk.f32.vlgmr.msra.gmra.mrb[0].mxu0 %vm269_vm3, %v2320_v43  ;;  %2501 = vmatpush3.msk.msra.mxu1 %vm273_vm2, %v1112_v44  ;;  %v1812_v43 = vld [vmem:[%s3222_s2 + $0xc0] sm:$0xff]  ;;  %v1813_v44 = vld [vmem:[%s3222_s2 + $0xc8] sm:$0xff] }
  0xae   : > { %2328 = vmatpush1.msk.msra.mxu0 %vm273_vm2, %v1110_v45  ;;  %v1284_v48 = vsel %vm1282_vm8, %v1277_v47, %v1279_v46  ;;  %2502 = vmatprep.mubr.msk.f32.mxu1 %vm2765_vm0, %v2764_v0  ;;  %v3077_v45 = vpack.c.bf16 %v1827_v39, %v1826_v38 }
  0xaf   : > { %2333 = vmatprep.subr.msk.mxu0 %vm273_vm2, %v1284_v48  ;;  %v1281_v49 = vpop.permute.xlu1 %1280  ;;  %1186 = vmatprep.mubr.f32.mxu0 %v2764_v0  ;;  %v1829_v48 = vld [vmem:[%s3222_s2 + $0x148] sm:$0xff] }
  0xb0   : > { %2505 = vmatprep.subr.mxu1 %v2764_v0  ;;  %v1285_v52 = vsel %vm1282_vm8, %v1279_v46, %v1281_v49  ;;  %v3081_v46 = vpack.c.bf16 %v1795_v42, %v1794_v41  ;;  %v3090_v49 = vpack.c.bf16 %v1813_v44, %v1812_v43 }
  0xb1   : > { %v1275_v50 = vpop.permute.xlu0 %1274 }
  0xb2   : > { %v1283_v53 = vsel %vm1282_vm8, %v1275_v50, %v1277_v47  ;;  %v1828_v47 = vld [vmem:[%s3222_s2 + $0x140] sm:$0xff] }
  0xb3   : > { %v1452_v54 = vpop.permute.xlu1 %1451  ;;  %v1796_v50 = vld [vmem:[%s3222_s2 + $0x40] sm:$0xff] }
  0xb4   : > { %2503 = vmatmul.mubr.msk.f32.vlgmr.msra.gmra.mrb[0].mxu1 %vm269_vm3, %v2326_v51 }
  0xb5   : > { %v1450_v55 = vpop.permute.xlu0 %1449  ;;  %2329 = vmatmul.mubr.msk.f32.vlgmr.msra.gmra.mrb[0].mxu0 %vm269_vm3, %v2326_v51  ;;  %2506 = vmatpush3.msk.msra.mxu1 %vm273_vm2, %v1285_v52  ;;  %v1797_v51 = vld [vmem:[%s3222_s2 + $0x48] sm:$0xff]  ;;  %v1814_v52 = vld [vmem:[%s3222_s2 + $0xd0] sm:$0xff] }
  0xb6   : > { %2334 = vmatpush1.msk.msra.mxu0 %vm273_vm2, %v1283_v53  ;;  %v1457_v56 = vsel %vm1455_vm9, %v1450_v55, %v1452_v54  ;;  %2507 = vmatprep.mubr.msk.f32.mxu1 %vm2765_vm0, %v2764_v0  ;;  %v1815_v53 = vld [vmem:[%s3222_s2 + $0xd8] sm:$0xff] }
  0xb7   : > { %2339 = vmatprep.subr.msk.mxu0 %vm273_vm2, %v1457_v56  ;;  %v1454_v57 = vpop.permute.xlu1 %1453  ;;  %1359 = vmatprep.mubr.f32.mxu0 %v2764_v0  ;;  %v1830_v56 = vld [vmem:[%s3222_s2 + $0x150] sm:$0xff] }
  0xb8   : > { %2510 = vmatprep.subr.mxu1 %v2764_v0  ;;  %v1458_v60 = vsel %vm1455_vm9, %v1452_v54, %v1454_v57  ;;  %v3105_v54 = vpack.c.bf16 %v1829_v48, %v1828_v47  ;;  %v1831_v57 = vld [vmem:[%s3222_s2 + $0x158] sm:$0xff] }
  0xb9   : > { %v1448_v58 = vpop.permute.xlu0 %1447 }
  0xba   : > { %v1456_v61 = vsel %vm1455_vm9, %v1448_v58, %v1450_v55  ;;  %v3109_v55 = vpack.c.bf16 %v1797_v51, %v1796_v50  ;;  %v3118_v58 = vpack.c.bf16 %v1815_v53, %v1814_v52 }
  0xbb   : > { %v1625_v62 = vpop.permute.xlu1 %1624 }
  0xbc   : > { %2508 = vmatmul.mubr.msk.f32.vlgmr.msra.gmra.mrb[0].mxu1 %vm269_vm3, %v2332_v59 }
  0xbd   : > { %v1623_v63 = vpop.permute.xlu0 %1622  ;;  %2335 = vmatmul.mubr.msk.f32.vlgmr.msra.gmra.mrb[0].mxu0 %vm269_vm3, %v2332_v59  ;;  %2511 = vmatpush3.msk.msra.mxu1 %vm273_vm2, %v1458_v60  ;;  %v1798_v59 = vld [vmem:[%s3222_s2 + $0x50] sm:$0xff]  ;;  %v1799_v60 = vld [vmem:[%s3222_s2 + $0x58] sm:$0xff] }
  0xbe   : > { %2340 = vmatpush1.msk.msra.mxu0 %vm273_vm2, %v1456_v61  ;;  %v1630_v1 = vsel %vm1628_vm10, %v1623_v63, %v1625_v62  ;;  %2512 = vmatprep.mubr.msk.f32.mxu1 %vm2765_vm0, %v2764_v0  ;;  %v1816_v61 = vld [vmem:[%s3222_s2 + $0xe0] sm:$0xff] }
  0xbf   : > { %2345 = vmatprep.subr.msk.mxu0 %vm273_vm2, %v1630_v1  ;;  %v1627_v2 = vpop.permute.xlu1 %1626  ;;  %1532 = vmatprep.mubr.f32.mxu0 %v2764_v0  ;;  %v3137_v1 = vpack.c.bf16 %v1799_v60, %v1798_v59 }
  0xc0   : > { %2515 = vmatprep.subr.mxu1 %v2764_v0  ;;  %v1631_v7 = vsel %vm1628_vm10, %v1625_v62, %v1627_v2  ;;  %v1817_v62 = vld [vmem:[%s3222_s2 + $0xe8] sm:$0xff]  ;;  %v1832_v2 = vld [vmem:[%s3222_s2 + $0x160] sm:$0xff] }
  0xc1   : > { %v1621_v3 = vpop.permute.xlu0 %1620 }
  0xc2   : > { %v1629_v8 = vsel %vm1628_vm10, %v1621_v3, %v1623_v63  ;;  %v3133_v63 = vpack.c.bf16 %v1831_v57, %v1830_v56  ;;  %v1833_v3 = vld [vmem:[%s3222_s2 + $0x168] sm:$0xff] }
  0xc3   : > { %v2641_v10 = vpack.c.bf16 %v1833_v3, %v1832_v2 }
  0xc4   : > { %2513 = vmatmul.mubr.msk.f32.vlgmr.msra.gmra.mrb[0].mxu1 %vm269_vm3, %v2338_v4 }
  0xc5   : > { %2341 = vmatmul.mubr.msk.f32.vlgmr.msra.gmra.mrb[0].mxu0 %vm269_vm3, %v2338_v4  ;;  %2516 = vmatpush3.msk.msra.mxu1 %vm273_vm2, %v1631_v7  ;;  %v3146_v4 = vpack.c.bf16 %v1817_v62, %v1816_v61  ;;  %v1818_v7 = vld [vmem:[%s3222_s2 + $0xf0] sm:$0xff] }
  0xc6   : > { %2346 = vmatpush1.msk.msra.mxu0 %vm273_vm2, %v1629_v8  ;;  %2517 = vmatprep.mubr.msk.f32.mxu1 %vm2765_vm0, %v2764_v0  ;;  %v1819_v8 = vld [vmem:[%s3222_s2 + $0xf8] sm:$0xff] }
  0xc7   : > { %1705 = vmatprep.mubr.f32.mxu0 %v2764_v0  ;;  %2622 = vmatprep.subr.bf16.mxu1 %v2774_v12  ;;  %v2618_v15 = vpack.c.bf16 %v1819_v8, %v1818_v7 }
  0xc8   : > { %2591 = vmatprep.subr.bf16.mxu0 %v2961_v9 }
  0xcc   : > { %2518 = vmatmul.mubr.msk.f32.vlgmr.msra.gmra.mrb[0].mxu1 %vm269_vm3, %v2344_v17 }
  0xcd   : > { %2347 = vmatmul.mubr.msk.f32.vlgmr.msra.gmra.mrb[0].mxu0 %vm269_vm3, %v2344_v17  ;;  %2624 = vmatpush3.bf16.msra.mxu1 %v2992_v18  ;;  %v1802_v17 = vld [vmem:[%s3222_s2 + $0x70] sm:$0xff] }
  0xce   : > { %2593 = vmatpush3.bf16.msra.mxu0 %v2994_v19  ;;  %2625 = vmatprep.subr.bf16.mxu1 %v2774_v12  ;;  %v2620_v21 = vpack.c.bf16 %v1803_v20, %v1802_v17 }
  0xcf   : > { %2595 = vmatprep.subr.bf16.mxu0 %v3002_v22  ;;  %2552 = vmatprep.mubr.msk.f32.mxu1 %vm2765_vm0, %v2764_v0 }
  0xd1   : > { %2627 = vmatpush3.bf16.msra.mxu1 %v3019_v27 }
  0xd2   : > { %2597 = vmatpush3.bf16.msra.mxu0 %v3023_v28  ;;  %2628 = vmatprep.subr.bf16.mxu1 %v2774_v12 }
  0xd3   : > { %2599 = vmatprep.subr.bf16.mxu0 %v3032_v31 }
  0xd5   : > { %2630 = vmatpush3.bf16.msra.mxu1 %v3049_v36 }
  0xd6   : > { %2601 = vmatpush3.bf16.msra.mxu0 %v3053_v37  ;;  %2631 = vmatprep.subr.bf16.mxu1 %v2774_v12 }
  0xd7   : > { %2603 = vmatprep.subr.bf16.mxu0 %v3062_v40 }
  0xd9   : > { %2633 = vmatpush3.bf16.msra.mxu1 %v3077_v45 }
  0xda   : > { %2605 = vmatpush3.bf16.msra.mxu0 %v3081_v46  ;;  %2634 = vmatprep.subr.bf16.mxu1 %v2774_v12 }
  0xdb   : > { %2607 = vmatprep.subr.bf16.mxu0 %v3090_v49 }
  0xdd   : > { %2636 = vmatpush3.bf16.msra.mxu1 %v3105_v54 }
  0xde   : > { %2609 = vmatpush3.bf16.msra.mxu0 %v3109_v55  ;;  %2637 = vmatprep.subr.bf16.mxu1 %v2774_v12 }
  0xdf   : > { %2611 = vmatprep.subr.bf16.mxu0 %v3118_v58 }
  0xe1   : > { %2639 = vmatpush3.bf16.msra.mxu1 %v3133_v63 }
  0xe2   : > { %2613 = vmatpush3.bf16.msra.mxu0 %v3137_v1  ;;  %2640 = vmatprep.subr.bf16.mxu1 %v2774_v12 }
  0xe3   : > { %2615 = vmatprep.subr.bf16.mxu0 %v3146_v4 }
  0xe5   : > { %2642 = vmatpush3.bf16.msra.mxu1 %v2641_v10 }
  0xe6   : > { %2617 = vmatpush3.bf16.msra.mxu0 %v2616_v11  ;;  %2643 = vmatprep.subr.bf16.mxu1 %v2774_v12 }
  0xe7   : > { %2619 = vmatprep.subr.bf16.mxu0 %v2618_v15 }
  0xe9   : > { %2645 = vmatpush3.bf16.msra.mxu1 %v2644_v16 }
  0xea   : > { %2678 = vmatprep.subr.bf16.mxu1 %v2774_v12  ;;  %2621 = vmatpush3.bf16.msra.mxu0 %v2620_v21 }
  0xeb   : > { %2647 = vmatprep.subr.bf16.mxu0 %v2961_v9 }
 0x19f   : > { %v1778_v23 = vpop.f32.mrb[0].mxu1 }
 0x1a0   : > { %1787 = vst [vmem:[%s237_s9 + $0x10] sm:$0xff] %v1778_v23  ;;  %v1707_v24 = vpop.f32.mrb[0].mxu0  ;;  %v2519_v25 = vpop.f32.mrb[1].mxu1  ;;  %2553 = vmatmul.mubr.f32.vlgmr.msra.gmra.mrb[2].mxu1 %v1778_v23 }
 0x1a1   : > { %1785 = vst [vmem:[%s237_s9] sm:$0xff] %v1707_v24  ;;  %2680 = vmatpush3.bf16.msra.mxu1 %v2992_v18  ;;  %v1709_v26 = vpop.f32.mrb[1].mxu0  ;;  %2587 = vmatprep.mubr.msk.f32.mxu1 %vm2765_vm0, %v2764_v0  ;;  %v1980_v0 = vmul.f32 %v1778_v23, %v1778_v23  ;;  %v1978_v9 = vmul.f32 %v1707_v24, %v1707_v24 }
 0x1a2   : > { %1786 = vst [vmem:[%s237_s9 + $0x8] sm:$0xff] %v1709_v26  ;;  %v1979_v29 = vmul.f32 %v1709_v26, %v1709_v26  ;;  %1900 = vmatprep.mubr.f32.mxu0 %v1709_v26  ;;  %2681 = vmatprep.subr.bf16.mxu1 %v2774_v12 }
 0x1a3   : > { %1901 = vmatmul.mubr.f32.vlgmr.msra.gmra.mrb[2].mxu0 %v1707_v24 }
 0x1a4   : > { %2649 = vmatpush3.bf16.msra.mxu0 %v2994_v19  ;;  %2093 = vmatprep.mubr.f32.mxu0 %v1979_v29 }
 0x1a5   : > { %2683 = vmatpush3.bf16.msra.mxu1 %v3019_v27  ;;  %2651 = vmatprep.subr.bf16.mxu0 %v3002_v22 }
 0x1a6   : > { %2684 = vmatprep.subr.bf16.mxu1 %v2774_v12 }
 0x1a8   : > { %2653 = vmatpush3.bf16.msra.mxu0 %v3023_v28 }
 0x1a9   : > { %2686 = vmatpush3.bf16.msra.mxu1 %v3049_v36  ;;  %2655 = vmatprep.subr.bf16.mxu0 %v3032_v31 }
 0x1aa   : > { %2687 = vmatprep.subr.bf16.mxu1 %v2774_v12 }
 0x1ac   : > { %2657 = vmatpush3.bf16.msra.mxu0 %v3053_v37 }
 0x1ad   : > { %2689 = vmatpush3.bf16.msra.mxu1 %v3077_v45  ;;  %2659 = vmatprep.subr.bf16.mxu0 %v3062_v40 }
 0x1ae   : > { %2690 = vmatprep.subr.bf16.mxu1 %v2774_v12 }
 0x1b0   : > { %2661 = vmatpush3.bf16.msra.mxu0 %v3081_v46 }
 0x1b1   : > { %2692 = vmatpush3.bf16.msra.mxu1 %v3105_v54  ;;  %2663 = vmatprep.subr.bf16.mxu0 %v3090_v49 }
 0x1b2   : > { %2693 = vmatprep.subr.bf16.mxu1 %v2774_v12 }
 0x1b4   : > { %2665 = vmatpush3.bf16.msra.mxu0 %v3109_v55 }
 0x1b5   : > { %2695 = vmatpush3.bf16.msra.mxu1 %v3133_v63  ;;  %2667 = vmatprep.subr.bf16.mxu0 %v3118_v58 }
 0x1b6   : > { %2696 = vmatprep.subr.bf16.mxu1 %v2774_v12 }
 0x1b8   : > { %2669 = vmatpush3.bf16.msra.mxu0 %v3137_v1 }
 0x1b9   : > { %2698 = vmatpush3.bf16.msra.mxu1 %v2641_v10  ;;  %2671 = vmatprep.subr.bf16.mxu0 %v3146_v4 }
 0x1ba   : > { %2699 = vmatprep.subr.bf16.mxu1 %v2774_v12 }
 0x1bc   : > { %2673 = vmatpush3.bf16.msra.mxu0 %v2616_v11 }
 0x1bd   : > { %2701 = vmatpush3.bf16.msra.mxu1 %v2644_v16  ;;  %2675 = vmatprep.subr.bf16.mxu0 %v2618_v15 }
 0x1c0   : > { %2677 = vmatpush3.bf16.msra.mxu0 %v2620_v21  ;;  %2588 = vmatmul.mubr.f32.vlgmr.msra.gmra.mrb[4].mxu1 %v1980_v0 }
 0x1c3   : > { %2094 = vmatmul.mubr.f32.vlgmr.msra.gmra.mrb[4].mxu0 %v1978_v9 }
 0x273   : > { %v1972_v18 = vpop.f32.mrb[2].mxu1 }
 0x274   : > { %v2554_v19 = vpop.f32.mrb[3].mxu1 }
 0x276   : > { %v2403_v22 = vpop.f32.mrb[2].mxu0 }
 0x277   : > { %v2404_v27 = vpop.f32.mrb[3].mxu0 }
 0x278   : > { %v2405_v28 = vadd.f32 %v2404_v27, %v2403_v22 }
 0x27a   : > { %v1973_v12 = vadd.f32 %v2405_v28, %v1972_v18 }
 0x27c   : > { %1977 = vst.msk [vmem:[%s241_s13] sm:$0xff] %vm1976_vm11, %v1973_v12 }
 0x293   : > { %v2165_v30 = vpop.f32.mrb[4].mxu1 }
 0x294   : > { %v2589_v31 = vpop.f32.mrb[5].mxu1 }
 0x296   : > { %v2455_v32 = vpop.f32.mrb[4].mxu0 }
 0x297   : > { %v2456_v33 = vpop.f32.mrb[5].mxu0 }
 0x298   : > { %v2457_v34 = vadd.f32 %v2456_v33, %v2455_v32 }
 0x29a   : > { %v2166_v35 = vadd.f32 %v2457_v34, %v2165_v30 }
 0x29c   : > { %2169 = vst.msk [vmem:[%s245_s16] sm:$0xff] %vm1976_vm11, %v2166_v35 }
 0x29d PF: > { %s16_s18 = sadd.s32 1, %s2762_s18  }
 0x29e   : > { %p13_p4 = scmp.ge.s32.totalorder %s16_s18, 4  }
 0x2a0   :  { %15 = sbr.rel (!%p13_p4) target bundleno = 1 (0x1), region = 94 }

</bundles_post_ra>
